<compile_context>
chip_gen: v7x
topology: tpu7x:2x2x1
jax: 0.10.0
libtpu: 0.0.40
codegen_flags: <defaults>
</compile_context>

<pallas_src>
import functools

import jax
import jax.numpy as jnp
from jax.experimental import pallas as pl
from jax.experimental.pallas import tpu as pltpu


# -----------------------------------------------------------------------------
# Kernel: one batch-tile of rows through  Linear -> GELU -> Linear.
# Weights/biases use constant index maps (single-buffered) so they stay
# resident in VMEM while the row tiles are pipelined over the grid.
# -----------------------------------------------------------------------------
def _embedfc_kernel(x_ref, w1_ref, b1_ref, w2_ref, b2_ref, o_ref, *, approx_gelu):
    x = x_ref[...]                                                     # (tm, d_in)
    h = jnp.dot(x, w1_ref[...], preferred_element_type=jnp.float32)    # MXU, f32 accumulate
    h = h + b1_ref[...]                                                # f32 bias
    # tanh GELU -> EUP (free slot); exact erf (nn.GELU parity) is a VPU
    # polynomial and only taken when explicitly requested.
    h = jax.nn.gelu(h, approximate=approx_gelu)
    h = h.astype(w2_ref.dtype)                                         # no-op in the f32 path
    o = jnp.dot(h, w2_ref[...], preferred_element_type=jnp.float32)    # MXU, f32 accumulate
    o = o + b2_ref[...]
    o_ref[...] = o.astype(o_ref.dtype)


def _round_up(x, m):
    return ((x + m - 1) // m) * m


def _vmem_defaults():
    """Generation-aware VMEM budget: v5e/v6e have 128 MiB VMEM (be generous),
    v7x has 64 MiB per TensorCore (stay conservative)."""
    vmem_cap = None
    try:
        vmem_cap = int(getattr(pltpu.get_tpu_info(), "vmem_capacity_bytes", 0)) or None
    except Exception:
        vmem_cap = None
    if vmem_cap is not None and vmem_cap >= (96 << 20):       # v5e / v6e
        return dict(vmem_tile_budget=48 << 20, vmem_limit_bytes=64 << 20, tm_cap=1024)
    # v7x (64 MiB per TC) or unknown: conservative defaults.
    return dict(vmem_tile_budget=20 << 20, vmem_limit_bytes=32 << 20, tm_cap=512)


def _resident_spec(shape):
    """Constant-index block (stays resident in VMEM). Single-buffered when the
    installed Pallas supports pipeline_mode — halves resident weight VMEM."""
    index_map = lambda i, _shape=shape: (0,) * len(_shape)
    try:
        return pl.BlockSpec(shape, index_map, pipeline_mode=pl.Buffered(1))
    except Exception:
        return pl.BlockSpec(shape, index_map)


def _choose_tm(n_rows, d_in, d_out, x_bytes, w1_bytes, w2_bytes, out_bytes,
               vmem_tile_budget, tm_cap):
    """Bounded, MXU/sublane-aligned batch tile that fits the VMEM budget."""
    sub = 8
    n_al = _round_up(max(int(n_rows), 1), sub)
    # Resident weights: 1 buffer each (pl.Buffered(1)) + single-buffered f32 biases.
    weight_bytes = d_in * d_out * w1_bytes + d_out * d_out * w2_bytes + 2 * d_out * 4
    # Per tile row: double-buffered x / out blocks, plus the live f32 hidden h
    # (and its low-precision copy fed to the second matmul, if any).
    per_row = 2 * (d_in * x_bytes + d_out * out_bytes) + d_out * 4
    if w2_bytes < 4:
        per_row += d_out * w2_bytes
    avail = max(vmem_tile_budget - weight_bytes, sub * per_row)
    tm = min(tm_cap, avail // per_row, n_al)
    # Aim for >= 2 grid steps per TensorCore when rows allow it (v7x megacore:
    # each core then still overlaps writeback/prefetch with compute).
    if n_al >= 4 * sub:
        tm = min(tm, _round_up(pl.cdiv(n_al, 4), sub))
    elif n_al >= 2 * sub:
        tm = min(tm, _round_up(pl.cdiv(n_al, 2), sub))
    # MXU-aligned row blocks (clean vmatmul cadence, unmasked vst); fall back
    # to sublane alignment for small tiles.
    for blk in (256, 128):
        if tm >= blk:
            tm = (tm // blk) * blk
            break
    else:
        tm = max(sub, (tm // sub) * sub)
    return int(tm)


def _run_embed_mlp(x2, w1, b1, w2, b2, *, out_dtype=None, approx_gelu=True,
                   vmem_cfg=None):
    """y = Linear2(GELU(Linear1(x2))) for x2 of shape (N, d_in).
    Weights are pre-transposed: w1 (d_in, d_out), w2 (d_out, d_out)."""
    n_rows, d_in = x2.shape
    d_out = w1.shape[1]
    assert w1.shape == (d_in, d_out) and w2.shape == (d_out, d_out)
    out_dtype = x2.dtype if out_dtype is None else out_dtype
    cfg = _vmem_defaults() if vmem_cfg is None else vmem_cfg

    x_bytes = jnp.dtype(x2.dtype).itemsize
    w1_bytes = jnp.dtype(w1.dtype).itemsize
    w2_bytes = jnp.dtype(w2.dtype).itemsize
    out_bytes = jnp.dtype(out_dtype).itemsize

    tm = _choose_tm(n_rows, d_in, d_out, x_bytes, w1_bytes, w2_bytes, out_bytes,
                    cfg["vmem_tile_budget"], cfg["tm_cap"])
    # No wrapper-side padding: the boundary block is masked by Pallas (rows are
    # independent, so the garbage padded rows are simply never written back).
    grid = (pl.cdiv(n_rows, tm),)

    b1_2d = b1.reshape(1, d_out).astype(jnp.float32)
    b2_2d = b2.reshape(1, d_out).astype(jnp.float32)

    kernel = functools.partial(_embedfc_kernel, approx_gelu=approx_gelu)
    return pl.pallas_call(
        kernel,
        out_shape=jax.ShapeDtypeStruct((n_rows, d_out), out_dtype),
        grid_spec=pltpu.PrefetchScalarGridSpec(
            num_scalar_prefetch=0,
            grid=grid,
            in_specs=[
                pl.BlockSpec((tm, d_in), lambda i: (i, 0)),   # x rows (pipelined)
                _resident_spec((d_in, d_out)),                # W1 (resident, 1 buffer)
                _resident_spec((1, d_out)),                   # b1
                _resident_spec((d_out, d_out)),               # W2 (resident, 1 buffer)
                _resident_spec((1, d_out)),                   # b2
            ],
            out_specs=pl.BlockSpec((tm, d_out), lambda i: (i, 0)),
        ),
        compiler_params=pltpu.CompilerParams(
            dimension_semantics=("parallel",),
            vmem_limit_bytes=cfg["vmem_limit_bytes"],
        ),
    )(x2, w1, b1_2d, w2, b2_2d)


def embed_fc(x, w1, b1, w2, b2, *, input_dim, use_bf16=False, out_dtype=None,
             approx_gelu=True):
    """Single EmbedFC: x.view(-1, input_dim) -> Linear -> GELU -> Linear."""
    x2 = x.reshape(-1, input_dim)
    if use_bf16:
        w2 = w2.astype(jnp.bfloat16)   # bf16 only for the big hidden->hidden weight
    return _run_embed_mlp(x2, w1, b1, w2, b2, out_dtype=out_dtype,
                          approx_gelu=approx_gelu)


# -----------------------------------------------------------------------------
# ContextUnet embedding path: fuse contextembed1/2 + timeembed1/2 into one call.
# -----------------------------------------------------------------------------
def init_embed_fc_params(key, input_dim, emb_dim, scale=0.1):
    k1, k2, k3, k4 = jax.random.split(key, 4)
    return dict(
        w1=scale * jax.random.normal(k1, (input_dim, emb_dim), jnp.float32),
        b1=scale * jax.random.normal(k2, (emb_dim,), jnp.float32),
        w2=scale * jax.random.normal(k3, (emb_dim, emb_dim), jnp.float32),
        b2=scale * jax.random.normal(k4, (emb_dim,), jnp.float32),
    )


def fuse_context_embed_params(heads, in_slices, d_in_total):
    """Pack K independent EmbedFC heads into one block-structured weight set.
    Off-(block-)diagonal entries are zero, so the packed MLP computes every
    head exactly while presenting a single lane-dense output slab.
    The bf16 copy of W2 (the only large tensor) is cached here, once.

    TODO(synk): at hidden_size >= 256 split the two 2*hs heads and the two hs
    heads into grouped matmuls instead of one dense block-diagonal W2 (avoids
    MXU work / weight DMA on ~72% zero blocks)."""
    d_out_total = sum(int(h["w1"].shape[1]) for h in heads)
    W1 = jnp.zeros((d_in_total, d_out_total), jnp.float32)
    W2 = jnp.zeros((d_out_total, d_out_total), jnp.float32)
    b1 = jnp.zeros((d_out_total,), jnp.float32)
    b2 = jnp.zeros((d_out_total,), jnp.float32)
    out_slices = []
    off = 0
    for h, (s, sz) in zip(heads, in_slices):
        e = int(h["w1"].shape[1])
        W1 = W1.at[s:s + sz, off:off + e].set(h["w1"])
        b1 = b1.at[off:off + e].set(h["b1"])
        W2 = W2.at[off:off + e, off:off + e].set(h["w2"])
        b2 = b2.at[off:off + e].set(h["b2"])
        out_slices.append((off, e))
        off += e
    return dict(w1=W1, b1=b1, w2=W2, b2=b2,
                w2_bf16=W2.astype(jnp.bfloat16),      # cached once (halves weight DMA)
                out_slices=tuple(out_slices))


def context_unet_embeddings(c, t, context_mask, fused, hidden_size, *,
                            use_bf16=False, out_dtype=None, approx_gelu=True):
    """ContextUnet.forward embedding path:
         c = c * (-1 * (1 - context_mask))
         cemb1 = contextembed1(c).view(-1, 2*hs, 1, 1); temb1 = timeembed1(t)...
    All four EmbedFC heads run in a single pallas_call on packed weights.
    In the bf16 fast path only the hidden->hidden matmul uses bf16 (x/W1 stay
    f32; the first contraction is over a tiny d_in and dominates precision)."""
    n_classes = c.shape[-1]
    c_masked = c * (-1.0 * (1.0 - context_mask))            # exactly as in ContextUnet.forward
    x_packed = jnp.concatenate(
        [c_masked.reshape(-1, n_classes), t.reshape(-1, 1)], axis=1)   # (N, n_classes + 1)
    w2 = fused["w2_bf16"] if use_bf16 else fused["w2"]
    out = _run_embed_mlp(x_packed, fused["w1"], fused["b1"], w2, fused["b2"],
                         out_dtype=out_dtype, approx_gelu=approx_gelu)
    (s1, e1), (s2, e2), (s3, e3), (s4, e4) = fused["out_slices"]
    cemb1 = out[:, s1:s1 + e1].reshape(-1, 2 * hidden_size, 1, 1)
    temb1 = out[:, s2:s2 + e2].reshape(-1, 2 * hidden_size, 1, 1)
    cemb2 = out[:, s3:s3 + e3].reshape(-1, hidden_size, 1, 1)
    temb2 = out[:, s4:s4 + e4].reshape(-1, hidden_size, 1, 1)
    return cemb1, temb1, cemb2, temb2


if __name__ == "__main__":
    key = jax.random.PRNGKey(0)
    k_heads, k_c, k_t, k_m, k_x, k_p = jax.random.split(key, 6)

    # ---- ContextUnet embedding path, small shapes:
    #      batch=8, n_classes=10, hidden_size=64 -> packed output width 6*64=384.
    n_classes, hidden_size, batch = 10, 64, 8
    kh = jax.random.split(k_heads, 4)
    ce1 = init_embed_fc_params(kh[0], n_classes, 2 * hidden_size)
    te1 = init_embed_fc_params(kh[1], 1, 2 * hidden_size)
    ce2 = init_embed_fc_params(kh[2], n_classes, hidden_size)
    te2 = init_embed_fc_params(kh[3], 1, hidden_size)
    fused = fuse_context_embed_params(
        [ce1, te1, ce2, te2],
        in_slices=[(0, n_classes), (n_classes, 1), (0, n_classes), (n_classes, 1)],
        d_in_total=n_classes + 1)

    labels = jax.random.randint(k_c, (batch,), 0, n_classes)
    c = jax.nn.one_hot(labels, n_classes, dtype=jnp.float32)                   # (8, 10)
    t = jax.random.uniform(k_t, (batch, 1), dtype=jnp.float32)                 # (8, 1)
    context_mask = jax.random.bernoulli(k_m, 0.1, (batch, n_classes)).astype(jnp.float32)

    cemb1, temb1, cemb2, temb2 = context_unet_embeddings(
        c, t, context_mask, fused, hidden_size)
    jax.block_until_ready((cemb1, temb1, cemb2, temb2))

    # Plain-JAX reference: exact EmbedFC.forward semantics (erf GELU, highest
    # precision).  The kernel's default tanh-GELU + MXU precision stays within
    # a few e-3 of this at these magnitudes.
    def ref_head(x2, p):
        hp = jnp.dot(x2, p["w1"], precision=jax.lax.Precision.HIGHEST) + p["b1"]
        hp = jax.nn.gelu(hp, approximate=False)
        return jnp.dot(hp, p["w2"], precision=jax.lax.Precision.HIGHEST) + p["b2"]

    c_masked = c * (-1.0 * (1.0 - context_mask))
    r_ce1 = ref_head(c_masked, ce1).reshape(-1, 2 * hidden_size, 1, 1)
    r_te1 = ref_head(t, te1).reshape(-1, 2 * hidden_size, 1, 1)
    r_ce2 = ref_head(c_masked, ce2).reshape(-1, hidden_size, 1, 1)
    r_te2 = ref_head(t, te2).reshape(-1, hidden_size, 1, 1)
    for got, ref in ((cemb1, r_ce1), (temb1, r_te1), (cemb2, r_ce2), (temb2, r_te2)):
        assert got.shape == ref.shape
        assert jnp.allclose(got, ref, atol=5e-3, rtol=5e-3)

    # Same fused path with the bf16 fast path (bf16 W2 + bf16 output for the
    # conv trunk; f32 first matmul / accumulation / bias / GELU).
    out_bf16 = context_unet_embeddings(c, t, context_mask, fused, hidden_size,
                                       use_bf16=True, out_dtype=jnp.bfloat16)
    jax.block_until_ready(out_bf16)
    for got, ref in zip(out_bf16, (r_ce1, r_te1, r_ce2, r_te2)):
        assert got.shape == ref.shape
        assert jnp.allclose(got.astype(jnp.float32), ref, atol=3e-2, rtol=3e-2)

    # ---- Standalone EmbedFC at a batch large enough to exercise multi-step
    #      MXU-aligned tiling (tm=256, 4 grid steps) and the masked boundary
    #      block (1000 = 3*256 + 232) with no wrapper-side pad/slice.
    n_big, in_dim, emb_dim = 1000, n_classes, 256
    xb = jax.random.normal(k_x, (n_big, in_dim), dtype=jnp.float32)
    pb = init_embed_fc_params(k_p, in_dim, emb_dim)
    ob = embed_fc(xb, pb["w1"], pb["b1"], pb["w2"], pb["b2"], input_dim=in_dim)
    ob = jax.block_until_ready(ob)
    rb = ref_head(xb, pb)
    assert ob.shape == (n_big, emb_dim)
    assert jnp.allclose(ob, rb, atol=5e-3, rtol=5e-3)

    print("KERNEL_OK")
</pallas_src>

<mosaic_0001>
module attributes {stable_mosaic.version = 11 : i64} {
  func.func @_embedfc_kernel(%arg0: i32, %arg1: memref<8x11xf32, #tpu.memory_space<vmem>>, %arg2: memref<11x384xf32, #tpu.memory_space<vmem>>, %arg3: memref<1x384xf32, #tpu.memory_space<vmem>>, %arg4: memref<384x384xf32, #tpu.memory_space<vmem>>, %arg5: memref<1x384xf32, #tpu.memory_space<vmem>>, %arg6: memref<8x384xf32, #tpu.memory_space<vmem>>) attributes {dimension_semantics = [#tpu.dimension_semantics<parallel>], iteration_bounds = array<i64: 1>, scalar_prefetch = 0 : i64, scratch_operands = 0 : i64, tpu.core_type = #tpu.core_type<tc>, window_params = [{transform_indices = @transform_0, window_bounds = array<i64: 8, 11>}, {pipeline_mode = #tpu.pipeline_mode<synchronous>, transform_indices = @transform_1, window_bounds = array<i64: 11, 384>}, {pipeline_mode = #tpu.pipeline_mode<synchronous>, transform_indices = @transform_2, window_bounds = array<i64: 1, 384>}, {pipeline_mode = #tpu.pipeline_mode<synchronous>, transform_indices = @transform_3, window_bounds = array<i64: 384, 384>}, {pipeline_mode = #tpu.pipeline_mode<synchronous>, transform_indices = @transform_4, window_bounds = array<i64: 1, 384>}, {transform_indices = @transform_5, window_bounds = array<i64: 8, 384>}]} {
    %c0 = arith.constant 0 : index
    %c0_0 = arith.constant 0 : index
    %0 = vector.load %arg1[%c0, %c0_0] : memref<8x11xf32, #tpu.memory_space<vmem>>, vector<8x11xf32>
    %c0_1 = arith.constant 0 : index
    %c0_2 = arith.constant 0 : index
    %1 = vector.load %arg2[%c0_1, %c0_2] : memref<11x384xf32, #tpu.memory_space<vmem>>, vector<11x384xf32>
    %cst = arith.constant dense<0.000000e+00> : vector<8x384xf32>
    %2 = tpu.matmul %0, %1, %cst {dimension_numbers = #tpu.dot_dimension_numbers<[1], [0], [0], [1], [0, 0, 1, 1], [], []>} : vector<8x11xf32>, vector<11x384xf32>, vector<8x384xf32> -> vector<8x384xf32>
    %c0_3 = arith.constant 0 : index
    %c0_4 = arith.constant 0 : index
    %3 = vector.load %arg3[%c0_3, %c0_4] : memref<1x384xf32, #tpu.memory_space<vmem>>, vector<1x384xf32>
    %4 = vector.broadcast %3 : vector<1x384xf32> to vector<8x384xf32>
    %5 = arith.addf %2, %4 : vector<8x384xf32>
    %6 = arith.mulf %5, %5 : vector<8x384xf32>
    %7 = arith.mulf %5, %6 : vector<8x384xf32>
    %cst_5 = arith.constant 4.471500e-02 : f32
    %8 = vector.broadcast %cst_5 : f32 to vector<8x384xf32>
    %9 = arith.mulf %8, %7 : vector<8x384xf32>
    %10 = arith.addf %5, %9 : vector<8x384xf32>
    %cst_6 = arith.constant 0.797884583 : f32
    %11 = vector.broadcast %cst_6 : f32 to vector<8x384xf32>
    %12 = arith.mulf %11, %10 : vector<8x384xf32>
    %13 = math.tanh %12 : vector<8x384xf32>
    %cst_7 = arith.constant 1.000000e+00 : f32
    %14 = vector.broadcast %cst_7 : f32 to vector<8x384xf32>
    %15 = arith.addf %14, %13 : vector<8x384xf32>
    %cst_8 = arith.constant 5.000000e-01 : f32
    %16 = vector.broadcast %cst_8 : f32 to vector<8x384xf32>
    %17 = arith.mulf %16, %15 : vector<8x384xf32>
    %18 = arith.mulf %5, %17 : vector<8x384xf32>
    %c0_9 = arith.constant 0 : index
    %c0_10 = arith.constant 0 : index
    %19 = vector.load %arg4[%c0_9, %c0_10] : memref<384x384xf32, #tpu.memory_space<vmem>>, vector<384x384xf32>
    %cst_11 = arith.constant dense<0.000000e+00> : vector<8x384xf32>
    %20 = tpu.matmul %18, %19, %cst_11 {dimension_numbers = #tpu.dot_dimension_numbers<[1], [0], [0], [1], [0, 0, 1, 1], [], []>} : vector<8x384xf32>, vector<384x384xf32>, vector<8x384xf32> -> vector<8x384xf32>
    %c0_12 = arith.constant 0 : index
    %c0_13 = arith.constant 0 : index
    %21 = vector.load %arg5[%c0_12, %c0_13] : memref<1x384xf32, #tpu.memory_space<vmem>>, vector<1x384xf32>
    %22 = vector.broadcast %21 : vector<1x384xf32> to vector<8x384xf32>
    %23 = arith.addf %20, %22 : vector<8x384xf32>
    %c0_14 = arith.constant 0 : index
    %c0_15 = arith.constant 0 : index
    %24 = vector.load %arg6[%c0_14, %c0_15] : memref<8x384xf32, #tpu.memory_space<vmem>>, vector<8x384xf32>
    tpu.vector_store %arg6[%c0_14, %c0_15], %23 {strides = array<i32>} : memref<8x384xf32, #tpu.memory_space<vmem>>, vector<8x384xf32>,
    return
  }
  func.func @transform_0(%arg0: i32) -> (i32, i32) {
    %c0_i32 = arith.constant 0 : i32
    %c0_i32_0 = arith.constant 0 : i32
    return %arg0, %c0_i32 : i32, i32
  }
  func.func @transform_1(%arg0: i32) -> (i32, i32) {
    %c0_i32 = arith.constant 0 : i32
    %c0_i32_0 = arith.constant 0 : i32
    %c0_i32_1 = arith.constant 0 : i32
    return %c0_i32, %c0_i32_0 : i32, i32
  }
  func.func @transform_2(%arg0: i32) -> (i32, i32) {
    %c0_i32 = arith.constant 0 : i32
    %c0_i32_0 = arith.constant 0 : i32
    %c0_i32_1 = arith.constant 0 : i32
    return %c0_i32, %c0_i32_0 : i32, i32
  }
  func.func @transform_3(%arg0: i32) -> (i32, i32) {
    %c0_i32 = arith.constant 0 : i32
    %c0_i32_0 = arith.constant 0 : i32
    %c0_i32_1 = arith.constant 0 : i32
    return %c0_i32, %c0_i32_0 : i32, i32
  }
  func.func @transform_4(%arg0: i32) -> (i32, i32) {
    %c0_i32 = arith.constant 0 : i32
    %c0_i32_0 = arith.constant 0 : i32
    %c0_i32_1 = arith.constant 0 : i32
    return %c0_i32, %c0_i32_0 : i32, i32
  }
  func.func @transform_5(%arg0: i32) -> (i32, i32) {
    %c0_i32 = arith.constant 0 : i32
    %c0_i32_0 = arith.constant 0 : i32
    return %arg0, %c0_i32 : i32, i32
  }
}

</mosaic_0001>

<bundles_post_ra>
// kernel: tpu_custom_call.1
= control target key start
LH: loop header
LB: loop body
LE: loop exit
PB: predicated region body
PF: predicated region fallthrough
CT: control target
= control target key end

     0   :  { %10 = vsyncpa [#allocation3], 0  ;;  %s1257_s0 = inlined_call_operand.hbm [shape: f32[8,11], index: 0, kind: input, shape index: {}]   ;;  %s1258_s1 = inlined_call_operand.hbm [shape: f32[11,384], index: 1, kind: input, shape index: {}]   ;;  %s1259_s2 = inlined_call_operand.vmem [shape: f32[1,384], index: 2, kind: input, shape index: {}]   ;;  %s1260_s3 = inlined_call_operand.hbm [shape: f32[384,384], index: 3, kind: input, shape index: {}]   ;;  %s1261_s4 = inlined_call_operand.vmem [shape: f32[1,384], index: 4, kind: input, shape index: {}]   ;;  %s1262_s5 = inlined_call_operand.hbm [shape: f32[8,384], index: 5, kind: output, shape index: {}]  }
   0x1   :  { %11 = vsyncpa [#allocation6], 0 }
   0x2   :  { %12 = vsyncpa [#allocation4], 0  ;;  %s1106_s18 = smov [#allocation5]   ;;  %s1012_s22 = scalar_lea.hbm %s1258_s1, 768 }
   0x3   :  { %s28_s19 = sshll.u32 %s1106_s18, 4  ;;  %p1013_p0 = scmp.ne.s32.totalorder %s1258_s1, %s1012_s22  ;;  %s29_s19 = int_to_ptr.vmem [resolvable:$true] %s28_s19 }
   0x4   :  { %p1016_p1 = scmp.lt.u32.totalorder %s1012_s22, %s1258_s1 }
   0x6   :  { %p1018_p2 = pnand %p1016_p1, %p1013_p0 }
   0x8   :  { %1021 = shalt.err (!%p1018_p2)
}
   0x9   :  { %s1022_s27 = scalar_lea.vmem %s29_s19, 768  ;;  %p1027_p4 = scmp.lt.s32.totalorder %s29_s19, %s29_s19 }
   0xa   :  { %p1023_p3 = scmp.ne.s32.totalorder %s29_s19, %s1022_s27  ;;  %p1028_p5 = scmp.lt.s32.totalorder %s1022_s27, %s1022_s27 }
   0xc   :  { %p1029_p6 = por %p1028_p5, %p1027_p4 }
   0xe   :  { %p1030_p7 = pnand %p1029_p6, %p1023_p3 }
  0x10   :  { %1033 = shalt.err (!%p1030_p7)
}
  0x11   :  { %s1107_s28 = smov 384   ;;  %s1108_s29 = smov 24  }
  0x12   :  { %34 = dma.hbm_to_vmem [thread:$0]  %s1258_s1, 768, %s29_s19, [#allocation6], %s1107_s28, %s1107_s28, %s1108_s29  }
  0x13   :  { %s1109_s7 = smov [#allocation2]   ;;  %s1110_s9 = smov [#allocation7]  }
  0x14   :  { %s19_s8 = sshll.u32 %s1109_s7, 4  ;;  %s42_s10 = sshll.u32 %s1110_s9, 4  ;;  %s20_s8 = int_to_ptr.vmem [resolvable:$true] %s19_s8  ;;  %s43_s10 = int_to_ptr.vmem [resolvable:$true] %s42_s10 }
  0x15   :  { %s1034_s13 = scalar_lea.hbm %s1257_s0, 128 }
  0x16   :  { %p1035_p8 = scmp.ne.s32.totalorder %s1257_s0, %s1034_s13  ;;  %p1038_p9 = scmp.lt.u32.totalorder %s1034_s13, %s1257_s0 }
  0x18   :  { %p1040_p10 = pnand %p1038_p9, %p1035_p8 }
  0x1a   :  { %1043 = shalt.err (!%p1040_p10)
}
  0x1b   :  { %s1044_s1 = scalar_lea.vmem %s20_s8, 128  ;;  %p1049_p12 = scmp.lt.s32.totalorder %s20_s8, %s20_s8 }
  0x1c   :  { %p1045_p11 = scmp.ne.s32.totalorder %s20_s8, %s1044_s1  ;;  %p1050_p13 = scmp.lt.s32.totalorder %s1044_s1, %s1044_s1 }
  0x1e   :  { %p1051_p0 = por %p1050_p13, %p1049_p12 }
  0x20   :  { %p1052_p1 = pnand %p1051_p0, %p1045_p11 }
  0x22   :  { %1055 = shalt.err (!%p1052_p1)
}
  0x23   :  { %22 = dma.hbm_to_vmem [thread:$0]  %s1257_s0, 128, %s20_s8, [#allocation3]  }
  0x24   :  { %s1056_s22 = scalar_lea.hbm %s1260_s3, 18432 }
  0x25   :  { %p1057_p2 = scmp.ne.s32.totalorder %s1260_s3, %s1056_s22  ;;  %p1060_p3 = scmp.lt.u32.totalorder %s1056_s22, %s1260_s3 }
  0x27   :  { %p1062_p4 = pnand %p1060_p3, %p1057_p2 }
  0x29   :  { %1065 = shalt.err (!%p1062_p4)
}
  0x2a   :  { %s1066_s27 = scalar_lea.vmem %s43_s10, 18432  ;;  %p1071_p6 = scmp.lt.s32.totalorder %s43_s10, %s43_s10 }
  0x2b   :  { %p1067_p5 = scmp.ne.s32.totalorder %s43_s10, %s1066_s27  ;;  %p1072_p7 = scmp.lt.s32.totalorder %s1066_s27, %s1066_s27 }
  0x2d   :  { %p1073_p8 = por %p1072_p7, %p1071_p6 }
  0x2f   :  { %p1074_p9 = pnand %p1073_p8, %p1067_p5 }
  0x31   :  { %1077 = shalt.err (!%p1074_p9)
}
  0x32   :  { %48 = dma.hbm_to_vmem [thread:$0]  %s1260_s3, 18432, %s43_s10, [#allocation6], %s1107_s28, %s1107_s28, %s1108_s29  }
  0x33   :  { %1100 = dma.done.wait [#allocation3], 128  }
  0x34   :  { %1101 = vsyncadd [#allocation3], 4294967168 }
  0x35   :  { %1102 = dma.done.wait [#allocation6], 19200  }
  0x36   :  { %1103 = vsyncadd [#allocation6], 4294948096  ;;  %v1111_v0 = vmov 0.0   ;;  %vm88_vm0 = vcmask 1042432   ;;  %vm1112_vm1 = vmmov 1   ;;  %v62_v2 = vld [vmem:[#allocation5 + $0x8] sm:$0xff] }
  0x37   :  { %162 = vmatprep.mubr.f32.mxu1 %v1111_v0  ;;  %vm1189_vm2 = vmpackc.low %vm88_vm0, %vm1112_vm1  ;;  %v65_v3 = vld [vmem:[#allocation5 + $0x20] sm:$0x7]  ;;  %v64_v6 = vld [vmem:[#allocation5 + $0x18] sm:$0x7]  ;;  %vm84_vm3 = vcmask 89088   ;;  %v1113_v22 = vmov 0.0|0.0  }
  0x38   :  { %v61_v4 = vld [vmem:[#allocation5] sm:$0xff]  ;;  %v830_v5 = vpack.c.bf16 %v65_v3, %v62_v2  ;;  %v63_v7 = vld [vmem:[#allocation5 + $0x10] sm:$0xff]  ;;  %v60_v9 = vld [vmem:[#allocation2] sm:$0xff]  ;;  %vm1114_vm4 = vmmov 0   ;;  %s1115_s6 = smov [#allocation8]  }
  0x39   :  { %v833_v8 = vpack.c.bf16 %v64_v6, %v61_v4  ;;  %v66_v10 = vld [vmem:[#allocation5 + $0x28] sm:$0x7]  ;;  %v267_v11 = vld [vmem:[#allocation7 + $0x8] sm:$0xff]  ;;  %v270_v12 = vld [vmem:[#allocation7 + $0x20] sm:$0xff]  ;;  %s718_s7 = sshll.u32 %s1115_s6, 4  ;;  %s719_s7 = int_to_ptr.vmem [resolvable:$true] %s718_s7 }
  0x3a   :  { %832 = vmatprep.subr.msk.bf16.mxu1 %vm1189_vm2, %v830_v5  ;;  %v840_v13 = vpack.c.bf16 %v270_v12, %v267_v11  ;;  %v266_v14 = vld [vmem:[#allocation7] sm:$0xff]  ;;  %v269_v15 = vld [vmem:[#allocation7 + $0x18] sm:$0xff]  ;;  %v837_v17 = vpack.c.bf16 %v66_v10, %v63_v7  ;;  %v276_v19 = vld [vmem:[#allocation7 + $0x50] sm:$0xff]  ;;  %p1083_p11 = scmp.lt.s32.totalorder %s719_s7, %s719_s7 }
  0x3b   :  { %v273_v16 = vld [vmem:[#allocation7 + $0x38] sm:$0xff]  ;;  %835 = vmatpush1.bf16.msk.msra.mxu1 %vm1189_vm2, %v833_v8  ;;  %v842_v18 = vpack.c.bf16 %v269_v15, %v266_v14  ;;  %v272_v20 = vld [vmem:[#allocation7 + $0x30] sm:$0xff]  ;;  %v275_v21 = vld [vmem:[#allocation7 + $0x48] sm:$0xff] }
  0x3c   :  { %836 = vmatprep.subr.bf16.mxu1 %v1113_v22  ;;  %841 = vmatprep.subr.bf16.mxu0 %v840_v13  ;;  %v844_v23 = vpack.c.bf16 %v276_v19, %v273_v16  ;;  %v279_v24 = vld [vmem:[#allocation7 + $0x68] sm:$0xff]  ;;  %v282_v25 = vld [vmem:[#allocation7 + $0x80] sm:$0xff]  ;;  %v846_v26 = vpack.c.bf16 %v275_v21, %v272_v20  ;;  %v281_v29 = vld [vmem:[#allocation7 + $0x78] sm:$0xff] }
  0x3d   :  { %843 = vmatpush1.bf16.msra.mxu0 %v842_v18  ;;  %v848_v27 = vpack.c.bf16 %v282_v25, %v279_v24  ;;  %v278_v28 = vld [vmem:[#allocation7 + $0x60] sm:$0xff]  ;;  %v285_v30 = vld [vmem:[#allocation7 + $0x98] sm:$0xff]  ;;  %v288_v31 = vld [vmem:[#allocation7 + $0xb0] sm:$0xff] }
  0x3e   :  { %730 = vmatmul.mubr.msk.f32.vlgmr.msra.gmra.mrb[0].mxu1 %vm84_vm3, %v60_v9  ;;  %845 = vmatprep.subr.bf16.mxu0 %v844_v23  ;;  %v850_v32 = vpack.c.bf16 %v281_v29, %v278_v28  ;;  %v852_v33 = vpack.c.bf16 %v288_v31, %v285_v30  ;;  %v284_v34 = vld [vmem:[#allocation7 + $0x90] sm:$0xff]  ;;  %v287_v35 = vld [vmem:[#allocation7 + $0xa8] sm:$0xff]  ;;  %v294_v37 = vld [vmem:[#allocation7 + $0xe0] sm:$0xff] }
  0x3f   :  { %839 = vmatpush3.bf16.msk.msra.mxu1 %vm1189_vm2, %v837_v17  ;;  %792 = vmatprep.mubr.msk.f32.mxu1 %vm1114_vm4, %v1111_v0  ;;  %v291_v36 = vld [vmem:[#allocation7 + $0xc8] sm:$0xff]  ;;  %v316_v38 = vld [vmem:[#allocation7 + $0x190] sm:$0xff]  ;;  %v854_v39 = vpack.c.bf16 %v287_v35, %v284_v34  ;;  %v290_v42 = vld [vmem:[#allocation7 + $0xc0] sm:$0xff] }
  0x40   :  { %v319_v40 = vld [vmem:[#allocation7 + $0x1a8] sm:$0xff]  ;;  %v856_v41 = vpack.c.bf16 %v294_v37, %v291_v36  ;;  %v293_v43 = vld [vmem:[#allocation7 + $0xd8] sm:$0xff]  ;;  %v300_v46 = vld [vmem:[#allocation7 + $0x110] sm:$0xff] }
  0x41   :  { %847 = vmatpush1.bf16.msra.mxu0 %v846_v26  ;;  %v936_v44 = vpack.c.bf16 %v319_v40, %v316_v38  ;;  %v297_v45 = vld [vmem:[#allocation7 + $0xf8] sm:$0xff]  ;;  %v858_v47 = vpack.c.bf16 %v293_v43, %v290_v42  ;;  %v296_v49 = vld [vmem:[#allocation7 + $0xf0] sm:$0xff]  ;;  %v299_v50 = vld [vmem:[#allocation7 + $0x108] sm:$0xff] }
  0x42   :  { %793 = vmatmul.mubr.msk.f32.vlgmr.msra.gmra.mrb[2].mxu1 %vm84_vm3, %v60_v9  ;;  %849 = vmatprep.subr.bf16.mxu0 %v848_v27  ;;  %v860_v48 = vpack.c.bf16 %v300_v46, %v297_v45  ;;  %v303_v51 = vld [vmem:[#allocation7 + $0x128] sm:$0xff]  ;;  %v306_v52 = vld [vmem:[#allocation7 + $0x140] sm:$0xff]  ;;  %v862_v53 = vpack.c.bf16 %v299_v50, %v296_v49  ;;  %v305_v56 = vld [vmem:[#allocation7 + $0x138] sm:$0xff] }
  0x43   :  { %937 = vmatprep.subr.bf16.mxu1 %v936_v44  ;;  %v864_v54 = vpack.c.bf16 %v306_v52, %v303_v51  ;;  %v302_v55 = vld [vmem:[#allocation7 + $0x120] sm:$0xff]  ;;  %v309_v57 = vld [vmem:[#allocation7 + $0x158] sm:$0xff]  ;;  %v312_v58 = vld [vmem:[#allocation7 + $0x170] sm:$0xff] }
  0x44   :  { %v866_v59 = vpack.c.bf16 %v305_v56, %v302_v55  ;;  %v868_v60 = vpack.c.bf16 %v312_v58, %v309_v57  ;;  %v308_v61 = vld [vmem:[#allocation7 + $0x150] sm:$0xff]  ;;  %v311_v62 = vld [vmem:[#allocation7 + $0x168] sm:$0xff]  ;;  %v318_v1 = vld [vmem:[#allocation7 + $0x1a0] sm:$0xff] }
  0x45   :  { %851 = vmatpush1.bf16.msra.mxu0 %v850_v32  ;;  %v315_v63 = vld [vmem:[#allocation7 + $0x188] sm:$0xff]  ;;  %v870_v2 = vpack.c.bf16 %v311_v62, %v308_v61  ;;  %v314_v4 = vld [vmem:[#allocation7 + $0x180] sm:$0xff]  ;;  %v317_v5 = vld [vmem:[#allocation7 + $0x198] sm:$0xff] }
  0x46   :  { %853 = vmatprep.subr.bf16.mxu0 %v852_v33  ;;  %v872_v3 = vpack.c.bf16 %v318_v1, %v315_v63  ;;  %v268_v6 = vld [vmem:[#allocation7 + $0x10] sm:$0xff]  ;;  %v874_v7 = vpack.c.bf16 %v317_v5, %v314_v4  ;;  %v271_v8 = vld [vmem:[#allocation7 + $0x28] sm:$0xff]  ;;  %v321_v10 = vld [vmem:[#allocation7 + $0x1b8] sm:$0xff] }
  0x47   :  { %v938_v9 = vpack.c.bf16 %v271_v8, %v268_v6  ;;  %v324_v11 = vld [vmem:[#allocation7 + $0x1d0] sm:$0xff]  ;;  %v322_v12 = vld [vmem:[#allocation7 + $0x1c0] sm:$0xff]  ;;  %v325_v14 = vld [vmem:[#allocation7 + $0x1d8] sm:$0xff] }
  0x48   :  { %v876_v13 = vpack.c.bf16 %v324_v11, %v321_v10  ;;  %v320_v15 = vld [vmem:[#allocation7 + $0x1b0] sm:$0xff]  ;;  %v323_v16 = vld [vmem:[#allocation7 + $0x1c8] sm:$0xff]  ;;  %v940_v17 = vpack.c.bf16 %v325_v14, %v322_v12  ;;  %v274_v19 = vld [vmem:[#allocation7 + $0x40] sm:$0xff] }
  0x49   :  { %855 = vmatpush1.bf16.msra.mxu0 %v854_v39  ;;  %939 = vmatpush3.bf16.msra.mxu1 %v938_v9  ;;  %v878_v18 = vpack.c.bf16 %v323_v16, %v320_v15  ;;  %v277_v20 = vld [vmem:[#allocation7 + $0x58] sm:$0xff]  ;;  %v327_v23 = vld [vmem:[#allocation7 + $0x1e8] sm:$0xff]  ;;  %v330_v24 = vld [vmem:[#allocation7 + $0x200] sm:$0xff] }
  0x4a   :  { %857 = vmatprep.subr.bf16.mxu0 %v856_v41  ;;  %v942_v21 = vpack.c.bf16 %v277_v20, %v274_v19  ;;  %941 = vmatprep.subr.bf16.mxu1 %v940_v17  ;;  %v328_v25 = vld [vmem:[#allocation7 + $0x1f0] sm:$0xff]  ;;  %v880_v26 = vpack.c.bf16 %v330_v24, %v327_v23  ;;  %v331_v27 = vld [vmem:[#allocation7 + $0x208] sm:$0xff]  ;;  %v326_v28 = vld [vmem:[#allocation7 + $0x1e0] sm:$0xff] }
  0x4b   :  { %v329_v29 = vld [vmem:[#allocation7 + $0x1f8] sm:$0xff]  ;;  %v944_v30 = vpack.c.bf16 %v331_v27, %v328_v25  ;;  %v280_v32 = vld [vmem:[#allocation7 + $0x70] sm:$0xff]  ;;  %v283_v33 = vld [vmem:[#allocation7 + $0x88] sm:$0xff] }
  0x4c   :  { %v882_v31 = vpack.c.bf16 %v329_v29, %v326_v28  ;;  %v946_v34 = vpack.c.bf16 %v283_v33, %v280_v32  ;;  %v333_v35 = vld [vmem:[#allocation7 + $0x218] sm:$0xff]  ;;  %v336_v36 = vld [vmem:[#allocation7 + $0x230] sm:$0xff]  ;;  %v334_v37 = vld [vmem:[#allocation7 + $0x220] sm:$0xff] }
  0x4d   :  { %859 = vmatpush1.bf16.msra.mxu0 %v858_v47  ;;  %943 = vmatpush3.bf16.msra.mxu1 %v942_v21  ;;  %v884_v38 = vpack.c.bf16 %v336_v36, %v333_v35  ;;  %v337_v39 = vld [vmem:[#allocation7 + $0x238] sm:$0xff]  ;;  %v332_v40 = vld [vmem:[#allocation7 + $0x210] sm:$0xff]  ;;  %v335_v41 = vld [vmem:[#allocation7 + $0x228] sm:$0xff]  ;;  %v69_v36 = vlaneseq }
  0x4e   :  { %861 = vmatprep.subr.bf16.mxu0 %v860_v48  ;;  %945 = vmatprep.subr.bf16.mxu1 %v944_v30  ;;  %v948_v42 = vpack.c.bf16 %v337_v39, %v334_v37  ;;  %v886_v43 = vpack.c.bf16 %v335_v41, %v332_v40  ;;  %v286_v44 = vld [vmem:[#allocation7 + $0xa0] sm:$0xff]  ;;  %v289_v45 = vld [vmem:[#allocation7 + $0xb8] sm:$0xff]  ;;  %v339_v47 = vld [vmem:[#allocation7 + $0x248] sm:$0xff] }
  0x4f   :  { %v950_v46 = vpack.c.bf16 %v289_v45, %v286_v44  ;;  %v342_v48 = vld [vmem:[#allocation7 + $0x260] sm:$0xff]  ;;  %v340_v49 = vld [vmem:[#allocation7 + $0x250] sm:$0xff]  ;;  %v343_v51 = vld [vmem:[#allocation7 + $0x268] sm:$0xff]  ;;  %v1205_v37 = vshrl.u32 %v69_v36, 7 }
  0x50   :  { %v888_v50 = vpack.c.bf16 %v342_v48, %v339_v47  ;;  %v338_v52 = vld [vmem:[#allocation7 + $0x240] sm:$0xff]  ;;  %v292_v56 = vld [vmem:[#allocation7 + $0xd0] sm:$0xff]  ;;  %v295_v57 = vld [vmem:[#allocation7 + $0xe8] sm:$0xff] }
  0x51   :  { %863 = vmatpush1.bf16.msra.mxu0 %v862_v53  ;;  %947 = vmatpush3.bf16.msra.mxu1 %v946_v34  ;;  %v341_v53 = vld [vmem:[#allocation7 + $0x258] sm:$0xff]  ;;  %v954_v58 = vpack.c.bf16 %v295_v57, %v292_v56  ;;  %v346_v61 = vld [vmem:[#allocation7 + $0x280] sm:$0xff]  ;;  %v344_v1 = vld [vmem:[#allocation7 + $0x270] sm:$0xff]  ;;  %v75_v40 = vsub.s32 1, %v1205_v37  ;;  %v79_v56 = vsub.s32 2, %v1205_v37 }
  0x52   :  { %865 = vmatprep.subr.bf16.mxu0 %v864_v54  ;;  %949 = vmatprep.subr.bf16.mxu1 %v948_v42  ;;  %v952_v54 = vpack.c.bf16 %v343_v51, %v340_v49  ;;  %v890_v55 = vpack.c.bf16 %v341_v53, %v338_v52  ;;  %v349_v63 = vld [vmem:[#allocation7 + $0x298] sm:$0xff]  ;;  %v298_v5 = vld [vmem:[#allocation7 + $0x100] sm:$0xff]  ;;  %v352_v10 = vld [vmem:[#allocation7 + $0x2b0] sm:$0xff] }
  0x53   :  { %v301_v6 = vld [vmem:[#allocation7 + $0x118] sm:$0xff]  ;;  %v354_v9 = vld [vmem:[#allocation7 + $0x2c0] sm:$0xff]  ;;  %v355_v11 = vld [vmem:[#allocation7 + $0x2c8] sm:$0xff] }
  0x54   :  { %v958_v8 = vpack.c.bf16 %v301_v6, %v298_v5  ;;  %v350_v14 = vld [vmem:[#allocation7 + $0x2a0] sm:$0xff]  ;;  %v353_v15 = vld [vmem:[#allocation7 + $0x2b8] sm:$0xff]  ;;  %v304_v16 = vld [vmem:[#allocation7 + $0x130] sm:$0xff] }
  0x55   :  { %867 = vmatpush1.bf16.msra.mxu0 %v866_v59  ;;  %951 = vmatpush3.bf16.msra.mxu1 %v950_v46  ;;  %v345_v59 = vld [vmem:[#allocation7 + $0x278] sm:$0xff]  ;;  %v898_v17 = vpack.c.bf16 %v353_v15, %v350_v14  ;;  %v360_v20 = vld [vmem:[#allocation7 + $0x2f0] sm:$0xff]  ;;  %v358_v24 = vld [vmem:[#allocation7 + $0x2e0] sm:$0xff] }
  0x56   :  { %869 = vmatprep.subr.bf16.mxu0 %v868_v60  ;;  %953 = vmatprep.subr.bf16.mxu1 %v952_v54  ;;  %v348_v60 = vld [vmem:[#allocation7 + $0x290] sm:$0xff]  ;;  %v357_v19 = vld [vmem:[#allocation7 + $0x2d8] sm:$0xff]  ;;  %v359_v28 = vld [vmem:[#allocation7 + $0x2e8] sm:$0xff] }
  0x57   :  { %v892_v62 = vpack.c.bf16 %v348_v60, %v345_v59  ;;  %v900_v23 = vpack.c.bf16 %v360_v20, %v357_v19  ;;  %v361_v25 = vld [vmem:[#allocation7 + $0x2f8] sm:$0xff]  ;;  %v310_v29 = vld [vmem:[#allocation7 + $0x160] sm:$0xff]  ;;  %v363_v33 = vld [vmem:[#allocation7 + $0x308] sm:$0xff] }
  0x58   :  { %v964_v27 = vpack.c.bf16 %v361_v25, %v358_v24  ;;  %v313_v30 = vld [vmem:[#allocation7 + $0x178] sm:$0xff]  ;;  %v366_v34 = vld [vmem:[#allocation7 + $0x320] sm:$0xff]  ;;  %v67_v39 = vld [vmem:[%s1259_s2] sm:$0x7] }
  0x59   :  { %871 = vmatpush1.bf16.msra.mxu0 %v870_v2  ;;  %955 = vmatpush3.bf16.msra.mxu1 %v954_v58  ;;  %v347_v2 = vld [vmem:[#allocation7 + $0x288] sm:$0xff]  ;;  %v966_v32 = vpack.c.bf16 %v313_v30, %v310_v29  ;;  %v904_v35 = vpack.c.bf16 %v366_v34, %v363_v33  ;;  %v76_v42 = vrot.slane %v67_v39, %v75_v40  ;;  %v362_v5 = vld [vmem:[#allocation7 + $0x300] sm:$0xff]  ;;  %v381_v34 = vld [vmem:[#allocation7 + $0x398] sm:$0xff] }
  0x5a   :  { %873 = vmatprep.subr.bf16.mxu0 %v872_v3  ;;  %v956_v3 = vpack.c.bf16 %v349_v63, %v346_v61  ;;  %v894_v4 = vpack.c.bf16 %v347_v2, %v344_v1  ;;  %v80_v60 = vrot.slane %v67_v39, %v79_v56  ;;  %v371_v20 = vld [vmem:[#allocation7 + $0x348] sm:$0xff]  ;;  %v378_v25 = vld [vmem:[#allocation7 + $0x380] sm:$0xff] }
  0x5b   :  { %v375_v24 = vld [vmem:[#allocation7 + $0x368] sm:$0xff]  ;;  %v374_v29 = vld [vmem:[#allocation7 + $0x360] sm:$0xff] }
  0x5c   :  { %957 = vmatprep.subr.bf16.mxu1 %v956_v3  ;;  %v912_v30 = vpack.c.bf16 %v378_v25, %v375_v24  ;;  %v379_v33 = vld [vmem:[#allocation7 + $0x388] sm:$0xff] }
  0x5d   :  { %875 = vmatpush1.bf16.msra.mxu0 %v874_v7  ;;  %v351_v7 = vld [vmem:[#allocation7 + $0x2a8] sm:$0xff]  ;;  %959 = vmatpush3.bf16.msra.mxu1 %v958_v8  ;;  %v364_v8 = vld [vmem:[#allocation7 + $0x310] sm:$0xff] }
  0x5e   :  { %877 = vmatprep.subr.bf16.mxu0 %v876_v13  ;;  %v896_v12 = vpack.c.bf16 %v354_v9, %v351_v7  ;;  %v960_v13 = vpack.c.bf16 %v355_v11, %v352_v10  ;;  %v365_v7 = vld [vmem:[#allocation7 + $0x318] sm:$0xff]  ;;  %v367_v9 = vld [vmem:[#allocation7 + $0x328] sm:$0xff] }
  0x5f   :  { %v369_v11 = vld [vmem:[#allocation7 + $0x338] sm:$0xff]  ;;  %v906_v15 = vpack.c.bf16 %v365_v7, %v362_v5  ;;  %v398_v7 = vld [vmem:[#allocation7 + $0x420] sm:$0xff] }
  0x60   :  { %961 = vmatprep.subr.bf16.mxu1 %v960_v13 }
  0x61   :  { %879 = vmatpush1.bf16.msra.mxu0 %v878_v18  ;;  %v307_v18 = vld [vmem:[#allocation7 + $0x148] sm:$0xff] }
  0x62   :  { %881 = vmatprep.subr.bf16.mxu0 %v880_v26  ;;  %v962_v21 = vpack.c.bf16 %v307_v18, %v304_v16  ;;  %v356_v26 = vld [vmem:[#allocation7 + $0x2d0] sm:$0xff]  ;;  %v969_v16 = vpack.c.bf16 %v367_v9, %v364_v8  ;;  %v401_v9 = vld [vmem:[#allocation7 + $0x438] sm:$0xff] }
  0x64   :  { %963 = vmatpush3.bf16.msra.mxu1 %v962_v21  ;;  %v370_v21 = vld [vmem:[#allocation7 + $0x340] sm:$0xff] }
  0x65   :  { %883 = vmatpush1.bf16.msra.mxu0 %v882_v31  ;;  %v902_v31 = vpack.c.bf16 %v359_v28, %v356_v26  ;;  %965 = vmatprep.subr.bf16.mxu1 %v964_v27 }
  0x66   :  { %885 = vmatprep.subr.bf16.mxu0 %v884_v38  ;;  %v71_v38 = vsub.s32 0, %v1205_v37 }
  0x68   :  { %967 = vmatpush3.bf16.msra.mxu1 %v966_v32  ;;  %v72_v41 = vrot.slane %v67_v39, %v71_v38  ;;  %v376_v32 = vld [vmem:[#allocation7 + $0x370] sm:$0xff] }
  0x69   :  { %887 = vmatpush1.bf16.msra.mxu0 %v886_v43  ;;  %968 = vmatprep.subr.bf16.mxu1 %v1113_v22 }
  0x6a   :  { %889 = vmatprep.subr.bf16.mxu0 %v888_v50 }
  0x6d   :  { %891 = vmatpush1.bf16.msra.mxu0 %v890_v55 }
  0x6e   :  { %893 = vmatprep.subr.bf16.mxu0 %v892_v62 }
  0x71   :  { %895 = vmatpush1.bf16.msra.mxu0 %v894_v4 }
  0x72   :  { %897 = vmatprep.subr.bf16.mxu0 %v896_v12  ;;  %v372_v12 = vld [vmem:[#allocation7 + $0x350] sm:$0xff] }
  0x73   :  { %v908_v19 = vpack.c.bf16 %v372_v12, %v369_v11  ;;  %v403_v11 = vld [vmem:[#allocation7 + $0x448] sm:$0xff] }
  0x75   :  { %899 = vmatpush1.bf16.msra.mxu0 %v898_v17  ;;  %v368_v17 = vld [vmem:[#allocation7 + $0x330] sm:$0xff] }
  0x76   :  { %901 = vmatprep.subr.bf16.mxu0 %v900_v23  ;;  %v373_v23 = vld [vmem:[#allocation7 + $0x358] sm:$0xff]  ;;  %v910_v27 = vpack.c.bf16 %v371_v20, %v368_v17  ;;  %v404_v17 = vld [vmem:[#allocation7 + $0x450] sm:$0xff]  ;;  %v406_v20 = vld [vmem:[#allocation7 + $0x460] sm:$0xff] }
  0x77   :  { %v972_v28 = vpack.c.bf16 %v373_v23, %v370_v21  ;;  %v409_v21 = vld [vmem:[#allocation7 + $0x478] sm:$0xff] }
  0x78   :  { %v990_v25 = vpack.c.bf16 %v409_v21, %v406_v20 }
  0x79   :  { %903 = vmatpush1.bf16.msra.mxu0 %v902_v31  ;;  %v377_v31 = vld [vmem:[#allocation7 + $0x378] sm:$0xff] }
  0x7a   :  { %905 = vmatprep.subr.bf16.mxu0 %v904_v35  ;;  %v384_v35 = vld [vmem:[#allocation7 + $0x3b0] sm:$0xff]  ;;  %v914_v39 = vpack.c.bf16 %v377_v31, %v374_v29  ;;  %v410_v31 = vld [vmem:[%s1261_s4] sm:$0x7]  ;;  %s1078_s4 = scalar_lea.vmem %s719_s7, 384 }
  0x7b   :  { %p1079_p10 = scmp.ne.s32.totalorder %s719_s7, %s1078_s4  ;;  %p1084_p12 = scmp.lt.s32.totalorder %s1078_s4, %s1078_s4 }
  0x7d   :  { %p1085_p13 = por %p1084_p12, %p1083_p11 }
  0x7f   :  { %p1086_p0 = pnand %p1085_p13, %p1079_p10 }
 0x111   :  { %v164_v43 = vpop.f32.mrb[0].mxu1 }
 0x112   :  { %v165_v44 = vadd.f32 %v164_v43, %v72_v41  ;;  %v166_v45 = vpop.f32.mrb[1].mxu1  ;;  %v975_v41 = vpack.c.bf16 %v379_v33, %v376_v32  ;;  %v916_v43 = vpack.c.bf16 %v384_v35, %v381_v34  ;;  %v423_v32 = vrot.slane %v410_v31, %v79_v56 }
 0x113   :  { %v167_v46 = vadd.f32 %v166_v45, %v76_v42  ;;  %v380_v42 = vld [vmem:[#allocation7 + $0x390] sm:$0xff]  ;;  %v382_v45 = vld [vmem:[#allocation7 + $0x3a0] sm:$0xff]  ;;  %v419_v33 = vrot.slane %v410_v31, %v75_v40 }
 0x114   :  { %v239_v47 = vmul.f32 %v165_v44, %v165_v44 }
 0x115   :  { %v240_v48 = vmul.f32 %v167_v46, %v167_v46  ;;  %v235_v49 = vpop.f32.mrb[2].mxu1 }
 0x116   :  { %v242_v50 = vmul.f32 %v239_v47, %v165_v44  ;;  %v794_v51 = vpop.f32.mrb[3].mxu1  ;;  %v1219_v61 = vadd.f32 %v235_v49, %v80_v60  ;;  %v387_v47 = vld [vmem:[#allocation7 + $0x3c8] sm:$0xff]  ;;  %v392_v60 = vld [vmem:[#allocation7 + $0x3f0] sm:$0xff] }
 0x117   :  { %v243_v52 = vmul.f32 %v240_v48, %v167_v46  ;;  %v390_v48 = vld [vmem:[#allocation7 + $0x3e0] sm:$0xff] }
 0x118   :  { %v245_v53 = vmul.f32 0.044715, %v242_v50  ;;  %v241_v62 = vmul.f32 %v1219_v61, %v1219_v61  ;;  %v386_v50 = vld [vmem:[#allocation7 + $0x3c0] sm:$0xff]  ;;  %v920_v51 = vpack.c.bf16 %v390_v48, %v387_v47 }
 0x119   :  { %v246_v54 = vmul.f32 0.044715, %v243_v52  ;;  %v389_v52 = vld [vmem:[#allocation7 + $0x3d8] sm:$0xff] }
 0x11a   :  { %v248_v55 = vadd.f32 %v245_v53, %v165_v44  ;;  %v244_v3 = vmul.f32 %v241_v62, %v1219_v61  ;;  %v388_v53 = vld [vmem:[#allocation7 + $0x3d0] sm:$0xff] }
 0x11b   :  { %v249_v57 = vadd.f32 %v246_v54, %v167_v46  ;;  %v391_v54 = vld [vmem:[#allocation7 + $0x3e8] sm:$0xff] }
 0x11c   :  { %v251_v58 = vmul.f32 0.7978846, %v248_v55  ;;  %v247_v13 = vmul.f32 0.044715, %v244_v3  ;;  %v393_v55 = vld [vmem:[#allocation7 + $0x3f8] sm:$0xff]  ;;  %v399_v3 = vld [vmem:[#allocation7 + $0x428] sm:$0xff] }
 0x11d   :  { %v252_v59 = vmul.f32 0.7978846, %v249_v57  ;;  %v396_v57 = vld [vmem:[#allocation7 + $0x410] sm:$0xff] }
 0x11e   :  { %1006 = vtanh.f32 %v251_v58  ;;  %v250_v26 = vadd.f32 %v247_v13, %v1219_v61  ;;  %v922_v58 = vpack.c.bf16 %v389_v52, %v386_v50  ;;  %v924_v62 = vpack.c.bf16 %v396_v57, %v393_v55  ;;  %v405_v13 = vld [vmem:[#allocation7 + $0x458] sm:$0xff] }
 0x11f   :  { %1008 = vtanh.f32 %v252_v59  ;;  %v981_v59 = vpack.c.bf16 %v391_v54, %v388_v53 }
 0x120   :  { %v253_v36 = vmul.f32 0.7978846, %v250_v26 }
 0x122   :  { %1010 = vtanh.f32 %v253_v36 }
 0x128   :  { %v1007_v63 = vpop.eup %1006 }
 0x129   :  { %v1009_v1 = vpop.eup %1008  ;;  %v257_v2 = vadd.f32 1.0, %v1007_v63  ;;  %v395_v63 = vld [vmem:[#allocation7 + $0x408] sm:$0xff] }
 0x12a   :  { %v258_v4 = vadd.f32 1.0, %v1009_v1  ;;  %v394_v1 = vld [vmem:[#allocation7 + $0x400] sm:$0xff]  ;;  %v926_v5 = vpack.c.bf16 %v395_v63, %v392_v60 }
 0x12b   :  { %v260_v6 = vmul.f32 0.5, %v257_v2  ;;  %v397_v2 = vld [vmem:[#allocation7 + $0x418] sm:$0xff] }
 0x12c   :  { %v261_v10 = vmul.f32 0.5, %v258_v4  ;;  %v402_v4 = vld [vmem:[#allocation7 + $0x440] sm:$0xff]  ;;  %v1011_v12 = vpop.eup %1010 }
 0x12d   :  { %v263_v18 = vmul.f32 %v260_v6, %v165_v44  ;;  %v383_v44 = vld [vmem:[#allocation7 + $0x3a8] sm:$0xff]  ;;  %v984_v6 = vpack.c.bf16 %v397_v2, %v394_v1  ;;  %v928_v8 = vpack.c.bf16 %v402_v4, %v399_v3  ;;  %v259_v23 = vadd.f32 1.0, %v1011_v12 }
 0x12e   :  { %v264_v14 = vmul.f32 %v261_v10, %v167_v46  ;;  %v385_v46 = vld [vmem:[#allocation7 + $0x3b8] sm:$0xff]  ;;  %v918_v49 = vpack.c.bf16 %v383_v44, %v380_v42  ;;  %v400_v10 = vld [vmem:[#allocation7 + $0x430] sm:$0xff] }
 0x12f   :  { %v262_v26 = vmul.f32 0.5, %v259_v23 }
 0x130   :  { %491 = vmatprep.mubr.f32.mxu0 %v264_v14  ;;  %633 = vmatprep.mubr.f32.mxu1 %v264_v14  ;;  %v408_v14 = vld [vmem:[#allocation7 + $0x470] sm:$0xff] }
 0x131   :  { %492 = vmatmul.mubr.f32.vlgmr.msra.gmra.mrb[0].mxu0 %v263_v18  ;;  %634 = vmatmul.mubr.f32.vlgmr.msra.gmra.mrb[4].mxu1 %v263_v18  ;;  %v932_v18 = vpack.c.bf16 %v408_v14, %v405_v13 }
 0x132   :  { %907 = vmatpush1.bf16.msra.mxu0 %v906_v15  ;;  %970 = vmatpush3.bf16.msra.mxu1 %v969_v16  ;;  %v930_v15 = vpack.c.bf16 %v401_v9, %v398_v7  ;;  %v987_v16 = vpack.c.bf16 %v403_v11, %v400_v10 }
 0x133   :  { %909 = vmatprep.subr.bf16.mxu0 %v908_v19  ;;  %971 = vmatprep.subr.bf16.mxu1 %v1113_v22  ;;  %v407_v19 = vld [vmem:[#allocation7 + $0x468] sm:$0xff] }
 0x134   :  { %562 = vmatprep.mubr.f32.mxu0 %v1111_v0  ;;  %827 = vmatprep.mubr.msk.f32.mxu1 %vm1114_vm4, %v1111_v0  ;;  %v978_v0 = vpack.c.bf16 %v385_v46, %v382_v45  ;;  %v934_v24 = vpack.c.bf16 %v407_v19, %v404_v17 }
 0x136   :  { %911 = vmatpush1.bf16.msra.mxu0 %v910_v27  ;;  %973 = vmatpush3.bf16.msra.mxu1 %v972_v28  ;;  %v265_v27 = vmul.f32 %v262_v26, %v1219_v61 }
 0x137   :  { %913 = vmatprep.subr.bf16.mxu0 %v912_v30  ;;  %974 = vmatprep.subr.bf16.mxu1 %v1113_v22 }
 0x13a   :  { %915 = vmatpush1.bf16.msra.mxu0 %v914_v39  ;;  %976 = vmatpush3.bf16.msra.mxu1 %v975_v41 }
 0x13b   :  { %917 = vmatprep.subr.bf16.mxu0 %v916_v43  ;;  %977 = vmatprep.subr.bf16.mxu1 %v1113_v22 }
 0x13e   :  { %919 = vmatpush1.bf16.msra.mxu0 %v918_v49  ;;  %979 = vmatpush3.bf16.msra.mxu1 %v978_v0 }
 0x13f   :  { %921 = vmatprep.subr.bf16.mxu0 %v920_v51  ;;  %980 = vmatprep.subr.bf16.mxu1 %v1113_v22 }
 0x142   :  { %923 = vmatpush1.bf16.msra.mxu0 %v922_v58  ;;  %982 = vmatpush3.bf16.msra.mxu1 %v981_v59 }
 0x143   :  { %925 = vmatprep.subr.bf16.mxu0 %v924_v62  ;;  %983 = vmatprep.subr.bf16.mxu1 %v1113_v22 }
 0x146   :  { %927 = vmatpush1.bf16.msra.mxu0 %v926_v5  ;;  %985 = vmatpush3.bf16.msra.mxu1 %v984_v6 }
 0x147   :  { %929 = vmatprep.subr.bf16.mxu0 %v928_v8  ;;  %986 = vmatprep.subr.bf16.mxu1 %v1113_v22 }
 0x14a   :  { %931 = vmatpush1.bf16.msra.mxu0 %v930_v15  ;;  %988 = vmatpush3.bf16.msra.mxu1 %v987_v16 }
 0x14b   :  { %933 = vmatprep.subr.bf16.mxu0 %v932_v18  ;;  %989 = vmatprep.subr.bf16.mxu1 %v1113_v22  ;;  %v415_v22 = vrot.slane %v410_v31, %v71_v38 }
 0x14e   :  { %935 = vmatpush1.bf16.msra.mxu0 %v934_v24  ;;  %991 = vmatpush3.bf16.msra.mxu1 %v990_v25 }
 0x151   :  { %563 = vmatmul.mubr.f32.vlgmr.msra.gmra.mrb[0].mxu0 %v265_v27  ;;  %828 = vmatmul.mubr.f32.vlgmr.msra.gmra.mrb[6].mxu1 %v265_v27 }
 0x204   :  { %v768_v28 = vpop.f32.mrb[4].mxu1 }
 0x205   :  { %v769_v29 = vpop.f32.mrb[5].mxu1 }
 0x206   :  { %v770_v30 = vadd.f32 %v769_v29, %v768_v28 }
 0x208   :  { %v636_v34 = vadd.f32 %v770_v30, %v423_v32 }
 0x224   :  { %v564_v61 = vpop.f32.mrb[0].mxu0  ;;  %v705_v35 = vpop.f32.mrb[6].mxu1 }
 0x225   :  { %v992_v36 = vadd.f32 %v564_v61, %v415_v22  ;;  %v706_v39 = vadd.f32 %v705_v35, %v636_v34  ;;  %v566_v41 = vpop.f32.mrb[1].mxu0  ;;  %v829_v42 = vpop.f32.mrb[7].mxu1 }
 0x226   :  { %v993_v43 = vadd.f32 %v566_v41, %v419_v33 }
 0x227   :  { %709 = vst [vmem:[#allocation8] sm:$0xff] %v992_v36  ;;  %711 = vst [vmem:[#allocation8 + $0x10] sm:$0xff] %v706_v39 }
 0x228   :  { %710 = vst [vmem:[#allocation8 + $0x8] sm:$0xff] %v993_v43 }
 0x229   :  { %1089 = shalt.err (!%p1086_p0)
}
 0x22a   :  { %s1090_s10 = scalar_lea.hbm %s1262_s5, 384 }
 0x22b   :  { %p1091_p1 = scmp.ne.s32.totalorder %s1262_s5, %s1090_s10  ;;  %p1094_p2 = scmp.lt.u32.totalorder %s1090_s10, %s1262_s5 }
 0x22d   :  { %p1096_p3 = pnand %p1094_p2, %p1091_p1 }
 0x22f   :  { %1099 = shalt.err (!%p1096_p3)
}
 0x230   :  { %721 = dma.vmem_to_hbm [thread:$0]  %s719_s7, 384, %s1262_s5, [#allocation4]  }
 0x231   :  { %1104 = dma.done.wait [#allocation4], 384  }
 0x232   :  { %1105 = vsyncadd [#allocation4], 4294966912 }
 0x233   :  { %725 = vsyncpa [#allocation3], 1 }
 0x234   :  { %726 = vsyncpa [#allocation6], 1 }
 0x235   :  { %727 = vsyncpa [#allocation4], 1 }

</bundles_post_ra>
